<compile_context>
chip_gen: v6e
topology: v6e:2x2x1
jax: 0.10.0
libtpu: 0.0.40
codegen_flags: <defaults>
</compile_context>

<pallas_src>
import functools

import jax
import jax.numpy as jnp
from jax.experimental import pallas as pl
from jax.experimental.pallas import tpu as pltpu


def _pick_tile(dim, target, align):
    """Largest tile <= target that is a multiple of `align` and evenly divides
    `dim`; falls back to the full dimension (always legal for a BlockSpec)."""
    if dim <= target:
        return dim
    t = (target // align) * align
    while t >= align:
        if dim % t == 0:
            return t
        t -= align
    return dim


# --------------------- fused Q/K/V projection kernel -----------------------

def _qkv_kernel(x_ref, wq_ref, wk_ref, wv_ref, bq_ref, bk_ref, bv_ref,
                q_ref, k_ref, v_ref, qacc, kacc, vacc):
    k_idx = pl.program_id(2)

    @pl.when(k_idx == 0)
    def _init():
        qacc[...] = jnp.zeros_like(qacc)
        kacc[...] = jnp.zeros_like(kacc)
        vacc[...] = jnp.zeros_like(vacc)

    # x tile is DMA'd once per grid step and reused by all three MXU matmuls.
    x = x_ref[...]                                            # (tm, tk)
    qacc[...] += jnp.dot(x, wq_ref[...], preferred_element_type=jnp.float32)
    kacc[...] += jnp.dot(x, wk_ref[...], preferred_element_type=jnp.float32)
    vacc[...] += jnp.dot(x, wv_ref[...], preferred_element_type=jnp.float32)

    @pl.when(k_idx == pl.num_programs(2) - 1)
    def _finalize():
        q_ref[...] = (qacc[...] + bq_ref[...]).astype(q_ref.dtype)
        k_ref[...] = (kacc[...] + bk_ref[...]).astype(k_ref.dtype)
        v_ref[...] = (vacc[...] + bv_ref[...]).astype(v_ref.dtype)


def qkv_projection(x2d, wq, wk, wv, bq, bk, bv):
    """q, k, v = x2d @ w* + b*  in a single tiled pallas_call."""
    M, K = x2d.shape
    N = wq.shape[1]
    tm = _pick_tile(M, 256, 8)     # sublane-aligned
    tn = _pick_tile(N, 256, 128)   # lane-aligned
    tk = _pick_tile(K, 512, 128)   # lane-aligned (x) / sublane-aligned (w)
    grid = (M // tm, N // tn, K // tk)

    x_spec = pl.BlockSpec((tm, tk), lambda i, j, k: (i, k))
    w_spec = pl.BlockSpec((tk, tn), lambda i, j, k: (k, j))
    b_spec = pl.BlockSpec((1, tn), lambda i, j, k: (0, j))
    o_spec = pl.BlockSpec((tm, tn), lambda i, j, k: (i, j))

    out_sds = jax.ShapeDtypeStruct((M, N), x2d.dtype)
    q, k, v = pl.pallas_call(
        _qkv_kernel,
        out_shape=(out_sds, out_sds, out_sds),
        grid=grid,
        in_specs=[x_spec, w_spec, w_spec, w_spec, b_spec, b_spec, b_spec],
        out_specs=(o_spec, o_spec, o_spec),
        scratch_shapes=[pltpu.VMEM((tm, tn), jnp.float32) for _ in range(3)],
        compiler_params=pltpu.CompilerParams(
            dimension_semantics=("parallel", "parallel", "arbitrary")),
    )(x2d, wq, wk, wv, bq.reshape(1, N), bk.reshape(1, N), bv.reshape(1, N))
    return q, k, v


# ----------------------- attention core (no softmax) -----------------------

def _attn_kernel(q_ref, k_ref, v_ref, o_ref, acc_ref, *, inv_scale_sq):
    kv = pl.program_id(2)

    @pl.when(kv == 0)
    def _init():
        acc_ref[...] = jnp.zeros_like(acc_ref)

    q = q_ref[...]            # (H, tq,  D)
    k = k_ref[...]            # (H, tkv, D)
    v = v_ref[...]            # (H, tkv, D)
    # QK^T without materializing a transpose: contract the D axes directly,
    # batched over heads (MXU consumes K in its native layout, XLU stays free).
    s = jnp.einsum("hqd,hkd->hqk", q, k, preferred_element_type=jnp.float32)
    acc_ref[...] += jnp.einsum("hqk,hkd->hqd", s, v,
                               preferred_element_type=jnp.float32)

    @pl.when(kv == pl.num_programs(2) - 1)
    def _finalize():
        # (Q K^T / scale^2) @ V == (Q K^T V) / scale^2: apply the scalar once
        # to the (H, tq, D) accumulator instead of the (tq, S) score matrix.
        # NOTE: softmax/dropout of the scores are dead code in the PyTorch
        # module and are intentionally absent.
        o_ref[...] = (acc_ref[...] * inv_scale_sq).astype(o_ref.dtype)


def attention_core(qh, kh, vh, inv_scale_sq):
    """Per-batch attention core (all heads per block): (Q K^T V) / scale^2."""
    B, H, S, D = qh.shape
    tq = _pick_tile(S, 256, 8)
    tkv = _pick_tile(S, 512, 8)
    grid = (B, S // tq, S // tkv)

    q_spec = pl.BlockSpec((None, H, tq, D), lambda b, i, kv: (b, 0, i, 0))
    kv_spec = pl.BlockSpec((None, H, tkv, D), lambda b, i, kv: (b, 0, kv, 0))
    o_spec = pl.BlockSpec((None, H, tq, D), lambda b, i, kv: (b, 0, i, 0))

    return pl.pallas_call(
        functools.partial(_attn_kernel, inv_scale_sq=inv_scale_sq),
        out_shape=jax.ShapeDtypeStruct((B, H, S, D), qh.dtype),
        grid=grid,
        in_specs=[q_spec, kv_spec, kv_spec],
        out_specs=o_spec,
        scratch_shapes=[pltpu.VMEM((H, tq, D), jnp.float32)],
        compiler_params=pltpu.CompilerParams(
            dimension_semantics=("parallel", "parallel", "arbitrary")),
    )(qh, kh, vh)


# ------------------------------ forward pass -------------------------------

def mha_forward(x, wq, bq, wk, bk, wv, bv, scale, num_heads):
    B, S, A = x.shape
    D = A // num_heads
    x2d = x.reshape(B * S, A)                       # changeViewForFirstMult

    q, k, v = qkv_projection(x2d, wq, wk, wv, bq, bk, bv)

    # transpose_for_scores uses .view(): plain row-major reshape (free in XLA).
    qh = q.reshape(B, num_heads, S, D)
    kh = k.reshape(B, num_heads, S, D)
    vh = v.reshape(B, num_heads, S, D)

    ctx = attention_core(qh, kh, vh, 1.0 / (scale * scale))  # (B, H, S, D)

    # changeViewAtTheEnd + final .view(): plain row-major reshape (free).
    return ctx.reshape(B, S, A)


def mha_reference(x, wq, bq, wk, bk, wv, bv, scale, num_heads):
    """Pure-JAX reference replicating the PyTorch forward."""
    B, S, A = x.shape
    D = A // num_heads
    x2d = x.reshape(B * S, A)
    q = (x2d @ wq + bq).reshape(B, num_heads, S, D)
    k = (x2d @ wk + bk).reshape(B, num_heads, S, D)
    v = (x2d @ wv + bv).reshape(B, num_heads, S, D)
    scores = jnp.einsum("bhsd,bhtd->bhst", q, k) / (scale * scale)
    ctx = jnp.einsum("bhst,bhtd->bhsd", scores, v)
    return ctx.reshape(B, S, A)


# ---------------------------------- main ------------------------------------

if __name__ == "__main__":
    B, S, HIDDEN, HEADS = 2, 8, 32, 4
    D = HIDDEN // HEADS

    key = jax.random.PRNGKey(0)
    kx, kq, kk, kv, kbq, kbk, kbv = jax.random.split(key, 7)

    x = jax.random.normal(kx, (B, S, HIDDEN), dtype=jnp.float32)

    # nn.Linear(hidden, hidden) weights; stored pre-transposed as (in, out).
    wq = jax.random.normal(kq, (HIDDEN, HIDDEN), dtype=jnp.float32) * 0.05
    wk = jax.random.normal(kk, (HIDDEN, HIDDEN), dtype=jnp.float32) * 0.05
    wv = jax.random.normal(kv, (HIDDEN, HIDDEN), dtype=jnp.float32) * 0.05
    bq = jax.random.normal(kbq, (HIDDEN,), dtype=jnp.float32) * 0.01
    bk = jax.random.normal(kbk, (HIDDEN,), dtype=jnp.float32) * 0.01
    bv = jax.random.normal(kbv, (HIDDEN,), dtype=jnp.float32) * 0.01

    # Deterministic stand-in for `torch.randn(1).item()`.
    scale = 1.2345

    out = mha_forward(x, wq, bq, wk, bk, wv, bv, scale, HEADS)
    out = jax.block_until_ready(out)

    ref = mha_reference(x, wq, bq, wk, bk, wv, bv, scale, HEADS)
    assert out.shape == (B, S, HIDDEN)
    assert jnp.allclose(out, ref, rtol=1e-4, atol=1e-4), "mismatch vs reference"

    print("KERNEL_OK")
</pallas_src>

<mosaic_0001>
module attributes {stable_mosaic.version = 11 : i64} {
  func.func @_qkv_kernel(%arg0: i32, %arg1: i32, %arg2: i32, %arg3: memref<16x32xf32, #tpu.memory_space<vmem>>, %arg4: memref<32x32xf32, #tpu.memory_space<vmem>>, %arg5: memref<32x32xf32, #tpu.memory_space<vmem>>, %arg6: memref<32x32xf32, #tpu.memory_space<vmem>>, %arg7: memref<1x32xf32, #tpu.memory_space<vmem>>, %arg8: memref<1x32xf32, #tpu.memory_space<vmem>>, %arg9: memref<1x32xf32, #tpu.memory_space<vmem>>, %arg10: memref<16x32xf32, #tpu.memory_space<vmem>>, %arg11: memref<16x32xf32, #tpu.memory_space<vmem>>, %arg12: memref<16x32xf32, #tpu.memory_space<vmem>>, %arg13: memref<16x32xf32, #tpu.memory_space<vmem>>, %arg14: memref<16x32xf32, #tpu.memory_space<vmem>>, %arg15: memref<16x32xf32, #tpu.memory_space<vmem>>) attributes {dimension_semantics = [#tpu.dimension_semantics<parallel>, #tpu.dimension_semantics<parallel>, #tpu.dimension_semantics<arbitrary>], iteration_bounds = array<i64: 1, 1, 1>, scalar_prefetch = 0 : i64, scratch_operands = 3 : i64, tpu.core_type = #tpu.core_type<tc>, window_params = [{transform_indices = @transform_0, window_bounds = array<i64: 16, 32>}, {transform_indices = @transform_1, window_bounds = array<i64: 32, 32>}, {transform_indices = @transform_2, window_bounds = array<i64: 32, 32>}, {transform_indices = @transform_3, window_bounds = array<i64: 32, 32>}, {transform_indices = @transform_4, window_bounds = array<i64: 1, 32>}, {transform_indices = @transform_5, window_bounds = array<i64: 1, 32>}, {transform_indices = @transform_6, window_bounds = array<i64: 1, 32>}, {transform_indices = @transform_7, window_bounds = array<i64: 16, 32>}, {transform_indices = @transform_8, window_bounds = array<i64: 16, 32>}, {transform_indices = @transform_9, window_bounds = array<i64: 16, 32>}]} {
    %c0_i32 = arith.constant 0 : i32
    %0 = arith.cmpi eq, %arg2, %c0_i32 : i32
    %1 = arith.extui %0 : i1 to i32
    %c0_i32_0 = arith.constant 0 : i32
    %2 = arith.cmpi ne, %1, %c0_i32_0 : i32
    scf.if %2 {
      %cst_24 = arith.constant 0.000000e+00 : f32
      %22 = vector.broadcast %cst_24 : f32 to vector<16x32xf32>
      %c0_25 = arith.constant 0 : index
      %c0_26 = arith.constant 0 : index
      %23 = vector.load %arg13[%c0_25, %c0_26] : memref<16x32xf32, #tpu.memory_space<vmem>>, vector<16x32xf32>
      tpu.vector_store %arg13[%c0_25, %c0_26], %22 {strides = array<i32>} : memref<16x32xf32, #tpu.memory_space<vmem>>, vector<16x32xf32>,
      %cst_27 = arith.constant 0.000000e+00 : f32
      %24 = vector.broadcast %cst_27 : f32 to vector<16x32xf32>
      %c0_28 = arith.constant 0 : index
      %c0_29 = arith.constant 0 : index
      %25 = vector.load %arg14[%c0_28, %c0_29] : memref<16x32xf32, #tpu.memory_space<vmem>>, vector<16x32xf32>
      tpu.vector_store %arg14[%c0_28, %c0_29], %24 {strides = array<i32>} : memref<16x32xf32, #tpu.memory_space<vmem>>, vector<16x32xf32>,
      %cst_30 = arith.constant 0.000000e+00 : f32
      %26 = vector.broadcast %cst_30 : f32 to vector<16x32xf32>
      %c0_31 = arith.constant 0 : index
      %c0_32 = arith.constant 0 : index
      %27 = vector.load %arg15[%c0_31, %c0_32] : memref<16x32xf32, #tpu.memory_space<vmem>>, vector<16x32xf32>
      tpu.vector_store %arg15[%c0_31, %c0_32], %26 {strides = array<i32>} : memref<16x32xf32, #tpu.memory_space<vmem>>, vector<16x32xf32>,
    } else {
    }
    %c0 = arith.constant 0 : index
    %c0_1 = arith.constant 0 : index
    %3 = vector.load %arg3[%c0, %c0_1] : memref<16x32xf32, #tpu.memory_space<vmem>>, vector<16x32xf32>
    %c0_2 = arith.constant 0 : index
    %c0_3 = arith.constant 0 : index
    %4 = vector.load %arg13[%c0_2, %c0_3] : memref<16x32xf32, #tpu.memory_space<vmem>>, vector<16x32xf32>
    %c0_4 = arith.constant 0 : index
    %c0_5 = arith.constant 0 : index
    %5 = vector.load %arg4[%c0_4, %c0_5] : memref<32x32xf32, #tpu.memory_space<vmem>>, vector<32x32xf32>
    %cst = arith.constant dense<0.000000e+00> : vector<16x32xf32>
    %6 = tpu.matmul %3, %5, %cst {dimension_numbers = #tpu.dot_dimension_numbers<[1], [0], [0], [1], [0, 0, 1, 1], [], []>} : vector<16x32xf32>, vector<32x32xf32>, vector<16x32xf32> -> vector<16x32xf32>
    %7 = arith.addf %4, %6 : vector<16x32xf32>
    %c0_6 = arith.constant 0 : index
    %c0_7 = arith.constant 0 : index
    %8 = vector.load %arg13[%c0_6, %c0_7] : memref<16x32xf32, #tpu.memory_space<vmem>>, vector<16x32xf32>
    tpu.vector_store %arg13[%c0_6, %c0_7], %7 {strides = array<i32>} : memref<16x32xf32, #tpu.memory_space<vmem>>, vector<16x32xf32>,
    %c0_8 = arith.constant 0 : index
    %c0_9 = arith.constant 0 : index
    %9 = vector.load %arg14[%c0_8, %c0_9] : memref<16x32xf32, #tpu.memory_space<vmem>>, vector<16x32xf32>
    %c0_10 = arith.constant 0 : index
    %c0_11 = arith.constant 0 : index
    %10 = vector.load %arg5[%c0_10, %c0_11] : memref<32x32xf32, #tpu.memory_space<vmem>>, vector<32x32xf32>
    %cst_12 = arith.constant dense<0.000000e+00> : vector<16x32xf32>
    %11 = tpu.matmul %3, %10, %cst_12 {dimension_numbers = #tpu.dot_dimension_numbers<[1], [0], [0], [1], [0, 0, 1, 1], [], []>} : vector<16x32xf32>, vector<32x32xf32>, vector<16x32xf32> -> vector<16x32xf32>
    %12 = arith.addf %9, %11 : vector<16x32xf32>
    %c0_13 = arith.constant 0 : index
    %c0_14 = arith.constant 0 : index
    %13 = vector.load %arg14[%c0_13, %c0_14] : memref<16x32xf32, #tpu.memory_space<vmem>>, vector<16x32xf32>
    tpu.vector_store %arg14[%c0_13, %c0_14], %12 {strides = array<i32>} : memref<16x32xf32, #tpu.memory_space<vmem>>, vector<16x32xf32>,
    %c0_15 = arith.constant 0 : index
    %c0_16 = arith.constant 0 : index
    %14 = vector.load %arg15[%c0_15, %c0_16] : memref<16x32xf32, #tpu.memory_space<vmem>>, vector<16x32xf32>
    %c0_17 = arith.constant 0 : index
    %c0_18 = arith.constant 0 : index
    %15 = vector.load %arg6[%c0_17, %c0_18] : memref<32x32xf32, #tpu.memory_space<vmem>>, vector<32x32xf32>
    %cst_19 = arith.constant dense<0.000000e+00> : vector<16x32xf32>
    %16 = tpu.matmul %3, %15, %cst_19 {dimension_numbers = #tpu.dot_dimension_numbers<[1], [0], [0], [1], [0, 0, 1, 1], [], []>} : vector<16x32xf32>, vector<32x32xf32>, vector<16x32xf32> -> vector<16x32xf32>
    %17 = arith.addf %14, %16 : vector<16x32xf32>
    %c0_20 = arith.constant 0 : index
    %c0_21 = arith.constant 0 : index
    %18 = vector.load %arg15[%c0_20, %c0_21] : memref<16x32xf32, #tpu.memory_space<vmem>>, vector<16x32xf32>
    tpu.vector_store %arg15[%c0_20, %c0_21], %17 {strides = array<i32>} : memref<16x32xf32, #tpu.memory_space<vmem>>, vector<16x32xf32>,
    %c0_i32_22 = arith.constant 0 : i32
    %19 = arith.cmpi eq, %arg2, %c0_i32_22 : i32
    %20 = arith.extui %19 : i1 to i32
    %c0_i32_23 = arith.constant 0 : i32
    %21 = arith.cmpi ne, %20, %c0_i32_23 : i32
    scf.if %21 {
      %c0_24 = arith.constant 0 : index
      %c0_25 = arith.constant 0 : index
      %22 = vector.load %arg13[%c0_24, %c0_25] : memref<16x32xf32, #tpu.memory_space<vmem>>, vector<16x32xf32>
      %c0_26 = arith.constant 0 : index
      %c0_27 = arith.constant 0 : index
      %23 = vector.load %arg7[%c0_26, %c0_27] : memref<1x32xf32, #tpu.memory_space<vmem>>, vector<1x32xf32>
      %24 = vector.broadcast %23 : vector<1x32xf32> to vector<16x32xf32>
      %25 = arith.addf %22, %24 : vector<16x32xf32>
      %c0_28 = arith.constant 0 : index
      %c0_29 = arith.constant 0 : index
      %26 = vector.load %arg10[%c0_28, %c0_29] : memref<16x32xf32, #tpu.memory_space<vmem>>, vector<16x32xf32>
      tpu.vector_store %arg10[%c0_28, %c0_29], %25 {strides = array<i32>} : memref<16x32xf32, #tpu.memory_space<vmem>>, vector<16x32xf32>,
      %c0_30 = arith.constant 0 : index
      %c0_31 = arith.constant 0 : index
      %27 = vector.load %arg14[%c0_30, %c0_31] : memref<16x32xf32, #tpu.memory_space<vmem>>, vector<16x32xf32>
      %c0_32 = arith.constant 0 : index
      %c0_33 = arith.constant 0 : index
      %28 = vector.load %arg8[%c0_32, %c0_33] : memref<1x32xf32, #tpu.memory_space<vmem>>, vector<1x32xf32>
      %29 = vector.broadcast %28 : vector<1x32xf32> to vector<16x32xf32>
      %30 = arith.addf %27, %29 : vector<16x32xf32>
      %c0_34 = arith.constant 0 : index
      %c0_35 = arith.constant 0 : index
      %31 = vector.load %arg11[%c0_34, %c0_35] : memref<16x32xf32, #tpu.memory_space<vmem>>, vector<16x32xf32>
      tpu.vector_store %arg11[%c0_34, %c0_35], %30 {strides = array<i32>} : memref<16x32xf32, #tpu.memory_space<vmem>>, vector<16x32xf32>,
      %c0_36 = arith.constant 0 : index
      %c0_37 = arith.constant 0 : index
      %32 = vector.load %arg15[%c0_36, %c0_37] : memref<16x32xf32, #tpu.memory_space<vmem>>, vector<16x32xf32>
      %c0_38 = arith.constant 0 : index
      %c0_39 = arith.constant 0 : index
      %33 = vector.load %arg9[%c0_38, %c0_39] : memref<1x32xf32, #tpu.memory_space<vmem>>, vector<1x32xf32>
      %34 = vector.broadcast %33 : vector<1x32xf32> to vector<16x32xf32>
      %35 = arith.addf %32, %34 : vector<16x32xf32>
      %c0_40 = arith.constant 0 : index
      %c0_41 = arith.constant 0 : index
      %36 = vector.load %arg12[%c0_40, %c0_41] : memref<16x32xf32, #tpu.memory_space<vmem>>, vector<16x32xf32>
      tpu.vector_store %arg12[%c0_40, %c0_41], %35 {strides = array<i32>} : memref<16x32xf32, #tpu.memory_space<vmem>>, vector<16x32xf32>,
    } else {
    }
    return
  }
  func.func @transform_0(%arg0: i32, %arg1: i32, %arg2: i32) -> (i32, i32) {
    %c0_i32 = arith.constant 0 : i32
    return %arg0, %arg2 : i32, i32
  }
  func.func @transform_1(%arg0: i32, %arg1: i32, %arg2: i32) -> (i32, i32) {
    %c0_i32 = arith.constant 0 : i32
    return %arg2, %arg1 : i32, i32
  }
  func.func @transform_2(%arg0: i32, %arg1: i32, %arg2: i32) -> (i32, i32) {
    %c0_i32 = arith.constant 0 : i32
    return %arg2, %arg1 : i32, i32
  }
  func.func @transform_3(%arg0: i32, %arg1: i32, %arg2: i32) -> (i32, i32) {
    %c0_i32 = arith.constant 0 : i32
    return %arg2, %arg1 : i32, i32
  }
  func.func @transform_4(%arg0: i32, %arg1: i32, %arg2: i32) -> (i32, i32) {
    %c0_i32 = arith.constant 0 : i32
    %c0_i32_0 = arith.constant 0 : i32
    return %c0_i32, %arg1 : i32, i32
  }
  func.func @transform_5(%arg0: i32, %arg1: i32, %arg2: i32) -> (i32, i32) {
    %c0_i32 = arith.constant 0 : i32
    %c0_i32_0 = arith.constant 0 : i32
    return %c0_i32, %arg1 : i32, i32
  }
  func.func @transform_6(%arg0: i32, %arg1: i32, %arg2: i32) -> (i32, i32) {
    %c0_i32 = arith.constant 0 : i32
    %c0_i32_0 = arith.constant 0 : i32
    return %c0_i32, %arg1 : i32, i32
  }
  func.func @transform_7(%arg0: i32, %arg1: i32, %arg2: i32) -> (i32, i32) {
    %c0_i32 = arith.constant 0 : i32
    return %arg0, %arg1 : i32, i32
  }
  func.func @transform_8(%arg0: i32, %arg1: i32, %arg2: i32) -> (i32, i32) {
    %c0_i32 = arith.constant 0 : i32
    return %arg0, %arg1 : i32, i32
  }
  func.func @transform_9(%arg0: i32, %arg1: i32, %arg2: i32) -> (i32, i32) {
    %c0_i32 = arith.constant 0 : i32
    return %arg0, %arg1 : i32, i32
  }
}

</mosaic_0001>

<bundles_post_ra>
// kernel: tpu_custom_call.1
= control target key start
LH: loop header
LB: loop body
LE: loop exit
PB: predicated region body
PF: predicated region fallthrough
CT: control target
= control target key end

     0   :  { %15 = vsyncpa [#allocation6], 0  ;;  %s808_s0 = inlined_call_operand.hbm [shape: f32[16,32], index: 0, kind: input, shape index: {}]   ;;  %s809_s1 = inlined_call_operand.hbm [shape: f32[32,32], index: 1, kind: input, shape index: {}]   ;;  %s810_s2 = inlined_call_operand.hbm [shape: f32[32,32], index: 2, kind: input, shape index: {}]   ;;  %s811_s3 = inlined_call_operand.hbm [shape: f32[32,32], index: 3, kind: input, shape index: {}]   ;;  %s812_s4 = inlined_call_operand.vmem [shape: f32[1,32], index: 4, kind: input, shape index: {}]   ;;  %s813_s5 = inlined_call_operand.vmem [shape: f32[1,32], index: 5, kind: input, shape index: {}]   ;;  %s814_s6 = inlined_call_operand.vmem [shape: f32[1,32], index: 6, kind: input, shape index: {}]   ;;  %s815_s7 = inlined_call_operand.hbm [shape: f32[16,32], index: 7, kind: output, shape index: {0}]   ;;  %s816_s8 = inlined_call_operand.hbm [shape: f32[16,32], index: 8, kind: output, shape index: {1}]   ;;  %s817_s9 = inlined_call_operand.hbm [shape: f32[16,32], index: 9, kind: output, shape index: {2}]  }
   0x1   :  { %16 = vsyncpa [#allocation9], 0 }
   0x2   :  { %17 = vsyncpa [#allocation12], 0 }
   0x3   :  { %18 = vsyncpa [#allocation7], 0 }
   0x4   :  { %19 = vsyncpa [#allocation15], 0  ;;  %s673_s30 = smov [#allocation8]   ;;  %s674_s11 = smov [#allocation5]  }
   0x5   :  { %s37_s10 = sshll.u32 %s673_s30, 4  ;;  %s25_s12 = sshll.u32 %s674_s11, 4  ;;  %s38_s10 = int_to_ptr.vmem [resolvable:$true] %s37_s10  ;;  %s26_s12 = int_to_ptr.vmem [resolvable:$true] %s25_s12 }
   0x6   :  { %s531_s13 = scalar_lea.vmem %s38_s10, 512  ;;  %p536_p1 = scmp.lt.s32.totalorder %s38_s10, %s38_s10 }
   0x7   :  { %p532_p0 = scmp.ne.s32.totalorder %s38_s10, %s531_s13  ;;  %p537_p2 = scmp.lt.s32.totalorder %s531_s13, %s531_s13 }
   0x9   :  { %p538_p3 = por %p537_p2, %p536_p1 }
   0xb   :  { %p539_p4 = pnand %p538_p3, %p532_p0 }
   0xd   :  { %542 = shalt.err (!%p539_p4)
}
   0xe   :  { %s675_s14 = smov 128   ;;  %s676_s15 = smov 8  }
   0xf   :  { %43 = dma.hbm_to_vmem [thread:$0]  %s809_s1, 512, %s38_s10, [#allocation9], %s675_s14, %s675_s14, %s676_s15  }
  0x10   :  { %s551_s18 = scalar_lea.vmem %s26_s12, 256  ;;  %p556_p6 = scmp.lt.s32.totalorder %s26_s12, %s26_s12 }
  0x11   :  { %p552_p5 = scmp.ne.s32.totalorder %s26_s12, %s551_s18  ;;  %p557_p7 = scmp.lt.s32.totalorder %s551_s18, %s551_s18 }
  0x13   :  { %p558_p8 = por %p557_p7, %p556_p6 }
  0x15   :  { %p559_p9 = pnand %p558_p8, %p552_p5 }
  0x17   :  { %562 = shalt.err (!%p559_p9)
}
  0x18   :  { %31 = dma.hbm_to_vmem [thread:$0]  %s808_s0, 256, %s26_s12, [#allocation6], %s675_s14, %s675_s14, %s676_s15  }
  0x19   :  { %s677_s21 = smov [#allocation10]   ;;  %s678_s23 = smov [#allocation11]  }
  0x1a   :  { %s49_s22 = sshll.u32 %s677_s21, 4  ;;  %s61_s24 = sshll.u32 %s678_s23, 4  ;;  %s50_s22 = int_to_ptr.vmem [resolvable:$true] %s49_s22  ;;  %s62_s24 = int_to_ptr.vmem [resolvable:$true] %s61_s24 }
  0x1b   :  { %s571_s1 = scalar_lea.vmem %s50_s22, 512  ;;  %p576_p11 = scmp.lt.s32.totalorder %s50_s22, %s50_s22 }
  0x1c   :  { %p572_p10 = scmp.ne.s32.totalorder %s50_s22, %s571_s1  ;;  %p577_p12 = scmp.lt.s32.totalorder %s571_s1, %s571_s1 }
  0x1e   :  { %p578_p13 = por %p577_p12, %p576_p11 }
  0x20   :  { %p579_p0 = pnand %p578_p13, %p572_p10 }
  0x22   :  { %582 = shalt.err (!%p579_p0)
}
  0x23   :  { %55 = dma.hbm_to_vmem [thread:$0]  %s810_s2, 512, %s50_s22, [#allocation9], %s675_s14, %s675_s14, %s676_s15  }
  0x24   :  { %s591_s0 = scalar_lea.vmem %s62_s24, 512  ;;  %p596_p2 = scmp.lt.s32.totalorder %s62_s24, %s62_s24 }
  0x25   :  { %p592_p1 = scmp.ne.s32.totalorder %s62_s24, %s591_s0  ;;  %p597_p3 = scmp.lt.s32.totalorder %s591_s0, %s591_s0 }
  0x27   :  { %p598_p4 = por %p597_p3, %p596_p2 }
  0x29   :  { %p599_p5 = pnand %p598_p4, %p592_p1 }
  0x2b   :  { %602 = shalt.err (!%p599_p5)
}
  0x2c   :  { %67 = dma.hbm_to_vmem [thread:$0]  %s811_s3, 512, %s62_s24, [#allocation12], %s675_s14, %s675_s14, %s676_s15  }
  0x2d   :  { %663 = dma.done.wait [#allocation6], 256  }
  0x2e   :  { %664 = vsyncadd [#allocation6], 4294967040 }
  0x2f   :  { %665 = dma.done.wait [#allocation9], 1024  }
  0x30   :  { %666 = vsyncadd [#allocation9], 4294966272 }
  0x31   :  { %667 = dma.done.wait [#allocation12], 512  }
  0x32   :  { %668 = vsyncadd [#allocation12], 4294966784  ;;  %vm90_vm0 = vcmask 261120   ;;  %v679_v0 = vmov 0.0   ;;  %v104_v1 = vld [vmem:[#allocation8 + $0x18] sm:$0xff]  ;;  %v103_v2 = vld [vmem:[#allocation8 + $0x10] sm:$0xff] }
  0x33   :  { %92 = vst.msk [vmem:[#allocation2 + $0x8] sm:$0xff] %vm90_vm0, %v679_v0  ;;  %91 = vst.msk [vmem:[#allocation2] sm:$0xff] %vm90_vm0, %v679_v0  ;;  %480 = vmatprep.subr.mxu0 %v104_v1  ;;  %v196_v3 = vld [vmem:[#allocation10 + $0x18] sm:$0xff]  ;;  %v97_v4 = vld [vmem:[#allocation5] sm:$0xff]  ;;  %s680_s29 = smov [#allocation13]  }
  0x34   :  { %93 = vst.msk [vmem:[#allocation3] sm:$0xff] %vm90_vm0, %v679_v0  ;;  %94 = vst.msk [vmem:[#allocation3 + $0x8] sm:$0xff] %vm90_vm0, %v679_v0  ;;  %481 = vmatpush3.msra.mxu0 %v104_v1  ;;  %v102_v5 = vld [vmem:[#allocation8 + $0x8] sm:$0xff]  ;;  %491 = vmatprep.subr.mxu1 %v196_v3  ;;  %v195_v6 = vld [vmem:[#allocation10 + $0x10] sm:$0xff]  ;;  %s408_s30 = sshll.u32 %s680_s29, 4  ;;  %s409_s30 = int_to_ptr.vmem [resolvable:$true] %s408_s30 }
  0x35   :  { %95 = vst.msk [vmem:[#allocation4] sm:$0xff] %vm90_vm0, %v679_v0  ;;  %96 = vst.msk [vmem:[#allocation4 + $0x8] sm:$0xff] %vm90_vm0, %v679_v0  ;;  %482 = vmatprep.subr.mxu0 %v103_v2  ;;  %492 = vmatpush3.msra.mxu1 %v196_v3  ;;  %v101_v7 = vld [vmem:[#allocation8] sm:$0xff]  ;;  %v194_v8 = vld [vmem:[#allocation10 + $0x8] sm:$0xff]  ;;  %s603_s17 = scalar_lea.vmem %s409_s30, 256  ;;  %p608_p7 = scmp.lt.s32.totalorder %s409_s30, %s409_s30 }
  0x36   :  { %483 = vmatpush3.msra.mxu0 %v103_v2  ;;  %488 = vmatprep.mubr.msk.f32.mxu0 %vm90_vm0, %v97_v4  ;;  %v98_v9 = vld [vmem:[#allocation5 + $0x8] sm:$0xff]  ;;  %v193_v11 = vld [vmem:[#allocation10] sm:$0xff]  ;;  %v280_v12 = vld [vmem:[#allocation11 + $0x10] sm:$0xff]  ;;  %p604_p6 = scmp.ne.s32.totalorder %s409_s30, %s603_s17  ;;  %p609_p8 = scmp.lt.s32.totalorder %s603_s17, %s603_s17 }
  0x37   :  { %484 = vmatprep.subr.mxu0 %v102_v5  ;;  %493 = vmatprep.subr.mxu1 %v195_v6  ;;  %v281_v10 = vld [vmem:[#allocation11 + $0x18] sm:$0xff]  ;;  %v279_v13 = vld [vmem:[#allocation11 + $0x8] sm:$0xff]  ;;  %v278_v14 = vld [vmem:[#allocation11] sm:$0xff] }
  0x38   :  { %485 = vmatpush3.msra.mxu0 %v102_v5  ;;  %494 = vmatpush3.msra.mxu1 %v195_v6  ;;  %v459_v30 = vld [vmem:[%s812_s4] ss:$0 sm:$0xff]  ;;  %s681_s4 = smov [#allocation14]   ;;  %p610_p9 = por %p609_p8, %p608_p7 }
  0x39   :  { %486 = vmatprep.subr.mxu0 %v101_v7  ;;  %495 = vmatprep.subr.mxu1 %v194_v8  ;;  %v460_v36 = vld [vmem:[%s813_s5] ss:$0 sm:$0xff]  ;;  %s420_s12 = sshll.u32 %s681_s4, 4  ;;  %s421_s12 = int_to_ptr.vmem [resolvable:$true] %s420_s12 }
  0x3a   :  { %487 = vmatpush3.msra.mxu0 %v101_v7  ;;  %496 = vmatpush3.msra.mxu1 %v194_v8  ;;  %v100_v15 = vld [vmem:[#allocation2 + $0x8] sm:$0xff]  ;;  %v99_v17 = vld [vmem:[#allocation2] sm:$0xff]  ;;  %p611_p10 = pnand %p610_p9, %p604_p6 }
  0x3b   :  { %489 = vmatmul.mubr.msk.f32.vlgmr.msra.gmra.mxu0 %vm90_vm0, %v98_v9  ;;  %502 = vmatprep.subr.mxu0 %v281_v10  ;;  %v192_v20 = vld [vmem:[#allocation3 + $0x8] sm:$0xff]  ;;  %v191_v23 = vld [vmem:[#allocation3] sm:$0xff]  ;;  %v461_v41 = vld [vmem:[%s814_s6] ss:$0 sm:$0xff] }
  0x3c   :  { %503 = vmatpush3.msra.mxu0 %v281_v10  ;;  %497 = vmatprep.subr.mxu1 %v193_v11  ;;  %v277_v26 = vld [vmem:[#allocation4 + $0x8] sm:$0xff]  ;;  %v276_v29 = vld [vmem:[#allocation4] sm:$0xff] }
  0x3d   :  { %504 = vmatprep.subr.mxu0 %v280_v12  ;;  %498 = vmatpush3.msra.mxu1 %v193_v11 }
  0x3e   :  { %505 = vmatpush3.msra.mxu0 %v280_v12  ;;  %499 = vmatprep.mubr.msk.f32.mxu1 %vm90_vm0, %v97_v4 }
  0x3f   :  { %506 = vmatprep.subr.mxu0 %v279_v13  ;;  %500 = vmatmul.mubr.msk.f32.vlgmr.msra.gmra.mxu1 %vm90_vm0, %v98_v9 }
  0x40   :  { %507 = vmatpush3.msra.mxu0 %v279_v13  ;;  %510 = vmatprep.mubr.msk.f32.mxu0 %vm90_vm0, %v97_v4 }
  0x41   :  { %508 = vmatprep.subr.mxu0 %v278_v14 }
  0x42   :  { %509 = vmatpush3.msra.mxu0 %v278_v14 }
  0x43   :  { %511 = vmatmul.mubr.msk.f32.vlgmr.msra.gmra.mxu0 %vm90_vm0, %v98_v9 }
  0xfb   :  { %v490_v16 = vpop.f32.mrf.mxu0 }
  0xfc   :  { %v188_v18 = vadd.f32 %v490_v16, %v100_v15 }
  0xfd   :  { %v178_v19 = vpop.f32.mrf.mxu0 }
  0xfe   :  { %190 = vst.msk [vmem:[#allocation2 + $0x8] sm:$0xff] %vm90_vm0, %v188_v18  ;;  %v187_v21 = vadd.f32 %v178_v19, %v99_v17 }
  0xff   :  { %v501_v22 = vpop.f32.mrf.mxu1 }
 0x100   :  { %189 = vst.msk [vmem:[#allocation2] sm:$0xff] %vm90_vm0, %v187_v21  ;;  %v273_v24 = vadd.f32 %v501_v22, %v192_v20 }
 0x101   :  { %v263_v25 = vpop.f32.mrf.mxu1 }
 0x102   :  { %275 = vst.msk [vmem:[#allocation3 + $0x8] sm:$0xff] %vm90_vm0, %v273_v24  ;;  %v272_v27 = vadd.f32 %v263_v25, %v191_v23 }
 0x103   :  { %v512_v28 = vpop.f32.mrf.mxu0 }
 0x104   :  { %274 = vst.msk [vmem:[#allocation3] sm:$0xff] %vm90_vm0, %v272_v27  ;;  %v358_v31 = vadd.f32 %v512_v28, %v277_v26 }
 0x105   :  { %v348_v32 = vpop.f32.mrf.mxu0  ;;  %v365_v33 = vld [vmem:[#allocation2 + $0x8] sm:$0xff] }
 0x106   :  { %360 = vst.msk [vmem:[#allocation4 + $0x8] sm:$0xff] %vm90_vm0, %v358_v31  ;;  %v357_v34 = vadd.f32 %v348_v32, %v276_v29  ;;  %v374_v35 = vadd.f32 %v459_v30, %v365_v33 }
 0x107   :  { %v364_v37 = vld [vmem:[#allocation2] sm:$0xff] }
 0x108   :  { %359 = vst.msk [vmem:[#allocation4] sm:$0xff] %vm90_vm0, %v357_v34  ;;  %v373_v38 = vadd.f32 %v459_v30, %v364_v37  ;;  %376 = vst.msk [vmem:[#allocation13 + $0x8] sm:$0xff] %vm90_vm0, %v374_v35 }
 0x109   :  { %v378_v39 = vld [vmem:[#allocation3 + $0x8] sm:$0xff] }
 0x10a   :  { %v387_v40 = vadd.f32 %v460_v36, %v378_v39  ;;  %375 = vst.msk [vmem:[#allocation13] sm:$0xff] %vm90_vm0, %v373_v38 }
 0x10b   :  { %v377_v42 = vld [vmem:[#allocation3] sm:$0xff] }
 0x10c   :  { %614 = shalt.err (!%p611_p10)
}
 0x10d   :  { %414 = dma.vmem_to_hbm [thread:$0]  %s409_s30, 256, %s815_s7, [#allocation7], %s675_s14, %s675_s14, %s676_s15   ;;  %v386_v43 = vadd.f32 %v460_v36, %v377_v42  ;;  %389 = vst.msk [vmem:[#allocation14 + $0x8] sm:$0xff] %vm90_vm0, %v387_v40  ;;  %v391_v44 = vld [vmem:[#allocation4 + $0x8] sm:$0xff] }
 0x10e   :  { %s682_s6 = smov [#allocation16]   ;;  %v400_v45 = vadd.f32 %v461_v41, %v391_v44  ;;  %s623_s20 = scalar_lea.vmem %s421_s12, 256 }
 0x10f   :  { %s432_s19 = sshll.u32 %s682_s6, 4  ;;  %388 = vst.msk [vmem:[#allocation14] sm:$0xff] %vm90_vm0, %v386_v43  ;;  %p624_p11 = scmp.ne.s32.totalorder %s421_s12, %s623_s20  ;;  %s433_s19 = int_to_ptr.vmem [resolvable:$true] %s432_s19 }
 0x110   :  { %p628_p12 = scmp.lt.s32.totalorder %s421_s12, %s421_s12  ;;  %p629_p13 = scmp.lt.s32.totalorder %s623_s20, %s623_s20 }
 0x112   :  { %p630_p0 = por %p629_p13, %p628_p12 }
 0x114   :  { %p631_p1 = pnand %p630_p0, %p624_p11 }
 0x116   :  { %634 = shalt.err (!%p631_p1)
}
 0x117   :  { %426 = dma.vmem_to_hbm [thread:$0]  %s421_s12, 256, %s816_s8, [#allocation15], %s675_s14, %s675_s14, %s676_s15   ;;  %v390_v46 = vld [vmem:[#allocation4] sm:$0xff]  ;;  %402 = vst.msk [vmem:[#allocation16 + $0x8] sm:$0xff] %vm90_vm0, %v400_v45 }
 0x118   :  { %v399_v47 = vadd.f32 %v461_v41, %v390_v46  ;;  %s643_s22 = scalar_lea.vmem %s433_s19, 256  ;;  %p648_p3 = scmp.lt.s32.totalorder %s433_s19, %s433_s19 }
 0x119   :  { %p644_p2 = scmp.ne.s32.totalorder %s433_s19, %s643_s22  ;;  %p649_p4 = scmp.lt.s32.totalorder %s643_s22, %s643_s22 }
 0x11a   :  { %401 = vst.msk [vmem:[#allocation16] sm:$0xff] %vm90_vm0, %v399_v47 }
 0x11b   :  { %p650_p5 = por %p649_p4, %p648_p3 }
 0x11d   :  { %p651_p6 = pnand %p650_p5, %p644_p2 }
 0x11f   :  { %654 = shalt.err (!%p651_p6)
}
 0x120   :  { %438 = dma.vmem_to_hbm [thread:$0]  %s433_s19, 256, %s817_s9, [#allocation15], %s675_s14, %s675_s14, %s676_s15  }
 0x121   :  { %669 = dma.done.wait [#allocation7], 256  }
 0x122   :  { %670 = vsyncadd [#allocation7], 4294967040 }
 0x123   :  { %671 = dma.done.wait [#allocation15], 512  }
 0x124   :  { %672 = vsyncadd [#allocation15], 4294966784 }
 0x125   :  { %448 = vsyncpa [#allocation6], 1 }
 0x126   :  { %449 = vsyncpa [#allocation9], 1 }
 0x127   :  { %450 = vsyncpa [#allocation12], 1 }
 0x128   :  { %451 = vsyncpa [#allocation7], 1 }
 0x129   :  { %452 = vsyncpa [#allocation15], 1 }

</bundles_post_ra>
